<compile_context>
chip_gen: v7x
topology: tpu7x:2x2x1
jax: 0.10.0
libtpu: 0.0.40
codegen_flags: <defaults>
</compile_context>

<pallas_src>
import jax
import jax.numpy as jnp
import numpy as np
from jax import lax
from jax.experimental import pallas as pl
from jax.experimental.pallas import tpu as pltpu


# Max f32 elements per accumulator array (real or imag) so the pair of fori_loop
# carries stays within ~16 vregs (64 KiB) and never spills to VMEM.
_ACC_ELEMS = 8192


def _compl_mul_kernel(row_ref, col_ref, o_ref):
    """One (corner, M-tile, col-tile) block of
         out[r, q, m] = sum_i row[i, r, m] * col[i, q, m]   (complex).

    row_ref : (2, Ci, R, TM) f32   stacked (re, im) "row" operand
    col_ref : (2, Ci, Q, TM) f32   stacked (re, im) "col" operand
    o_ref   : (2, R,  Q, TM) f32   stacked (re, im) result
    """
    ci = row_ref.shape[1]
    n_r = row_ref.shape[2]
    n_q = col_ref.shape[2]
    tm = row_ref.shape[3]

    # Register blocking: each (RB, CB, TM) output chunk is accumulated over Ci
    # entirely in vregs, then stored once (lane-dense, TM multiple of 128).
    cb = min(n_q, 8)
    rb = max(1, min(n_r, _ACC_ELEMS // max(1, cb * tm)))

    r0 = 0
    while r0 < n_r:
        rbs = min(rb, n_r - r0)
        q0 = 0
        while q0 < n_q:
            cbs = min(cb, n_q - q0)

            def body(i, carry, r0=r0, rbs=rbs, q0=q0, cbs=cbs):
                acc_r, acc_i = carry
                xr = row_ref[0, i, r0:r0 + rbs, :]          # (rbs, TM)
                xi = row_ref[1, i, r0:r0 + rbs, :]
                wr = col_ref[0, i, q0:q0 + cbs, :]          # (cbs, TM)
                wi = col_ref[1, i, q0:q0 + cbs, :]
                # Gauss 3-multiply complex product, outer over (rbs, cbs) per lane:
                #   k1 = wr*(xr+xi); re += k1 - xi*(wr+wi); im += k1 + xr*(wi-wr)
                ws = (wr + wi)[None, :, :]                  # (1, cbs, TM)
                wd = (wi - wr)[None, :, :]
                xs = (xr + xi)[:, None, :]                  # (rbs, 1, TM)
                k1 = wr[None, :, :] * xs                    # (rbs, cbs, TM)
                acc_r = acc_r + (k1 - xi[:, None, :] * ws)
                acc_i = acc_i + (k1 + xr[:, None, :] * wd)
                return acc_r, acc_i

            init = (jnp.zeros((rbs, cbs, tm), jnp.float32),
                    jnp.zeros((rbs, cbs, tm), jnp.float32))
            unroll = 4 if (rbs * cbs * tm <= 2048 and ci >= 4) else (2 if ci >= 2 else 1)
            acc_r, acc_i = lax.fori_loop(0, ci, body, init, unroll=unroll)

            o_ref[0, r0:r0 + rbs, q0:q0 + cbs, :] = acc_r
            o_ref[1, r0:r0 + rbs, q0:q0 + cbs, :] = acc_i
            q0 += cbs
        r0 += rbs


def _vmem_params():
    """(block_budget_bytes, vmem_limit_bytes) sized per TPU generation."""
    cap = 64 << 20                               # conservative default: v7x per-TC VMEM
    try:
        cap = int(pltpu.get_tpu_info().vmem_capacity_bytes) or cap
    except Exception:
        pass
    block_budget = max(4 << 20, min(cap // 4, 16 << 20))   # pipelined blocks only
    vmem_limit = max(block_budget + (8 << 20), min(cap // 2, 40 << 20))
    return block_budget, vmem_limit


def _pick_col_tile(cols):
    """Sublane-aligned grid tile over the larger of (B, Co) for pipeline depth."""
    if cols <= 16:
        return cols
    for t in (16, 8):
        if cols % t == 0:
            return t
    return cols


def _pick_lane_tile(mp128, rows, ci, tcol, col_tiles, budget_bytes):
    """Largest multiple-of-128 divisor of mp128 whose double-buffered block footprint
    fits the budget, preferring >= 4 pipeline steps per corner."""
    cands = [t for t in range(128, mp128 + 1, 128) if mp128 % t == 0]

    def footprint(tm):   # f32, (re,im) stacked, x2 double-buffer per stream
        return 16 * tm * (ci * rows + ci * tcol + rows * tcol)

    feasible = [t for t in cands if footprint(t) <= budget_bytes] or [128]
    deep = [t for t in feasible if (mp128 // t) * col_tiles >= 4]
    return max(deep) if deep else max(feasible)


def compl_mul2d_pallas(x_corners, w_corners):
    """x_corners: (2, B, Ci, m1, m2) c64; w_corners: (2, Ci, Co, m1, m2) c64.
    Returns (2, B, Co, m1, m2) c64 == einsum('cbixy,cioxy->cboxy')."""
    n_c, B, Ci, m1, m2 = x_corners.shape
    Co = w_corners.shape[2]
    M = m1 * m2

    # (re, im) stacked once; layout (corner, 2, Ci, axis, M): per-channel slices are
    # contiguous (axis, M) slabs and the flattened-mode axis M is the lane dim.
    x_s = jnp.stack([jnp.real(x_corners), jnp.imag(x_corners)], axis=1)   # (c,2,B,Ci,m1,m2)
    x_s = x_s.transpose(0, 1, 3, 2, 4, 5).reshape(n_c, 2, Ci, B, M).astype(jnp.float32)
    w_s = jnp.stack([jnp.real(w_corners), jnp.imag(w_corners)], axis=1)   # (c,2,Ci,Co,m1,m2)
    w_s = w_s.reshape(n_c, 2, Ci, Co, M).astype(jnp.float32)

    # The einsum is symmetric in (B, Co): put the larger one on the sublane-critical
    # "col" axis of the output so vregs stay dense, and grid-tile it for pipelining.
    if Co >= B:
        row_op, col_op, rows, cols, swap_out = x_s, w_s, B, Co, False
    else:
        row_op, col_op, rows, cols, swap_out = w_s, x_s, Co, B, True

    mp128 = pl.cdiv(M, 128) * 128
    tcol = _pick_col_tile(cols)
    col_tiles = cols // tcol
    block_budget, vmem_limit = _vmem_params()
    tm = _pick_lane_tile(mp128, rows, Ci, tcol, col_tiles, block_budget)
    m_tiles = mp128 // tm

    pad = mp128 - M
    if pad:
        zpad = ((0, 0),) * 4 + ((0, pad),)
        row_op = jnp.pad(row_op, zpad)
        col_op = jnp.pad(col_op, zpad)

    row_spec = pl.BlockSpec((pl.Squeezed(), 2, Ci, rows, tm),
                            lambda c, m, q: (c, 0, 0, 0, m))   # ignores q: not re-fetched
    col_spec = pl.BlockSpec((pl.Squeezed(), 2, Ci, tcol, tm),
                            lambda c, m, q: (c, 0, 0, q, m))
    out_spec = pl.BlockSpec((pl.Squeezed(), 2, rows, tcol, tm),
                            lambda c, m, q: (c, 0, 0, q, m))

    out = pl.pallas_call(
        _compl_mul_kernel,
        grid=(n_c, m_tiles, col_tiles),          # col axis innermost
        in_specs=[row_spec, col_spec],
        out_specs=out_spec,
        out_shape=jax.ShapeDtypeStruct((n_c, 2, rows, cols, mp128), jnp.float32),
        compiler_params=pltpu.CompilerParams(
            dimension_semantics=("parallel", "parallel", "parallel"),
            vmem_limit_bytes=int(vmem_limit)),
    )(row_op, col_op)

    out_c = (out[:, 0] + 1j * out[:, 1]).astype(jnp.complex64)   # (n_c, rows, cols, mp128)
    out_c = out_c[..., :M]
    if swap_out:
        out_c = out_c.transpose(0, 2, 1, 3)                      # -> (n_c, B, Co, M)
    return out_c.reshape(n_c, B, Co, m1, m2)


def spectral_conv2d_fast(x, weights1, weights2, modes1, modes2):
    """Forward of SpectralConv2d_fast. x: (B, C_in, H, W) f32 -> (B, C_out, H, W) f32."""
    B, Ci, H, W = x.shape
    Co = weights1.shape[1]
    Wf = W // 2 + 1

    # TODO(synk): rfft2/irfft2 have no Pallas TPU primitive; kept as plain-JAX glue.
    x_ft = jnp.fft.rfft2(x).astype(jnp.complex64)             # (B, Ci, H, Wf)

    top = x_ft[:, :, :modes1, :modes2]                         # low positive freqs
    bot = x_ft[:, :, H - modes1:, :modes2]                     # low negative freqs
    x_corners = jnp.stack([top, bot], axis=0)                  # (2, B, Ci, m1, m2)
    w_corners = jnp.stack([weights1, weights2], axis=0)        # (2, Ci, Co, m1, m2)

    out_corners = compl_mul2d_pallas(x_corners, w_corners)     # (2, B, Co, m1, m2)

    out_ft = jnp.zeros((B, Co, H, Wf), dtype=jnp.complex64)
    out_ft = out_ft.at[:, :, :modes1, :modes2].set(out_corners[0])
    out_ft = out_ft.at[:, :, H - modes1:, :modes2].set(out_corners[1])

    return jnp.fft.irfft2(out_ft, s=(H, W)).astype(jnp.float32)


def _reference(x, weights1, weights2, modes1, modes2):
    """Pure-JAX reference replicating the PyTorch forward exactly."""
    B, Ci, H, W = x.shape
    Co = weights1.shape[1]
    Wf = W // 2 + 1
    x_ft = jnp.fft.rfft2(x).astype(jnp.complex64)
    out_ft = jnp.zeros((B, Co, H, Wf), dtype=jnp.complex64)
    out_ft = out_ft.at[:, :, :modes1, :modes2].set(
        jnp.einsum('bixy,ioxy->boxy', x_ft[:, :, :modes1, :modes2], weights1))
    out_ft = out_ft.at[:, :, H - modes1:, :modes2].set(
        jnp.einsum('bixy,ioxy->boxy', x_ft[:, :, H - modes1:, :modes2], weights2))
    return jnp.fft.irfft2(out_ft, s=(H, W)).astype(jnp.float32)


if __name__ == "__main__":
    B, Ci, Co = 2, 4, 4
    H = W = 16
    modes1 = modes2 = 4

    key = jax.random.PRNGKey(0)
    kx, kw1r, kw1i, kw2r, kw2i = jax.random.split(key, 5)

    x = jax.random.normal(kx, (B, Ci, H, W), dtype=jnp.float32)

    # torch.rand(..., dtype=torch.cfloat): real & imag each U[0,1), scaled by 1/(Ci*Co)
    scale = 1.0 / (Ci * Co)
    weights1 = scale * (jax.random.uniform(kw1r, (Ci, Co, modes1, modes2), dtype=jnp.float32)
                        + 1j * jax.random.uniform(kw1i, (Ci, Co, modes1, modes2), dtype=jnp.float32))
    weights2 = scale * (jax.random.uniform(kw2r, (Ci, Co, modes1, modes2), dtype=jnp.float32)
                        + 1j * jax.random.uniform(kw2i, (Ci, Co, modes1, modes2), dtype=jnp.float32))
    weights1 = weights1.astype(jnp.complex64)
    weights2 = weights2.astype(jnp.complex64)

    out = spectral_conv2d_fast(x, weights1, weights2, modes1, modes2)
    out = jax.block_until_ready(out)

    ref = jax.block_until_ready(_reference(x, weights1, weights2, modes1, modes2))
    np.testing.assert_allclose(np.asarray(out), np.asarray(ref), rtol=1e-4, atol=2e-5)

    assert out.shape == (B, Co, H, W) and out.dtype == jnp.float32
    print("KERNEL_OK")
</pallas_src>

<mosaic_0001>
module attributes {stable_mosaic.version = 11 : i64} {
  func.func @_compl_mul_kernel(%arg0: i32, %arg1: i32, %arg2: i32, %arg3: memref<1x2x4x2x128xf32, #tpu.memory_space<vmem>>, %arg4: memref<1x2x4x4x128xf32, #tpu.memory_space<vmem>>, %arg5: memref<1x2x2x4x128xf32, #tpu.memory_space<vmem>>) attributes {dimension_semantics = [#tpu.dimension_semantics<parallel>, #tpu.dimension_semantics<parallel>, #tpu.dimension_semantics<parallel>], iteration_bounds = array<i64: 2, 1, 1>, scalar_prefetch = 0 : i64, scratch_operands = 0 : i64, tpu.core_type = #tpu.core_type<tc>, window_params = [{transform_indices = @transform_0, window_bounds = array<i64: 1, 2, 4, 2, 128>}, {transform_indices = @transform_1, window_bounds = array<i64: 1, 2, 4, 4, 128>}, {transform_indices = @transform_2, window_bounds = array<i64: 1, 2, 2, 4, 128>}]} {
    %cst = arith.constant 0.000000e+00 : f32
    %0 = vector.broadcast %cst : f32 to vector<2x4x128xf32>
    %cst_0 = arith.constant 0.000000e+00 : f32
    %1 = vector.broadcast %cst_0 : f32 to vector<2x4x128xf32>
    %c0_i32 = arith.constant 0 : i32
    %c0 = arith.constant 0 : index
    %c0_1 = arith.constant 0 : index
    %2 = arith.index_cast %c0_i32 : i32 to index
    %c0_2 = arith.constant 0 : index
    %c0_3 = arith.constant 0 : index
    %3 = vector.load %arg3[%c0, %c0_1, %2, %c0_2, %c0_3] : memref<1x2x4x2x128xf32, #tpu.memory_space<vmem>>, vector<1x1x1x2x128xf32>
    %4 = vector.shape_cast %3 : vector<1x1x1x2x128xf32> to vector<2x128xf32>
    %c0_4 = arith.constant 0 : index
    %c1 = arith.constant 1 : index
    %5 = arith.index_cast %c0_i32 : i32 to index
    %c0_5 = arith.constant 0 : index
    %c0_6 = arith.constant 0 : index
    %6 = vector.load %arg3[%c0_4, %c1, %5, %c0_5, %c0_6] : memref<1x2x4x2x128xf32, #tpu.memory_space<vmem>>, vector<1x1x1x2x128xf32>
    %7 = vector.shape_cast %6 : vector<1x1x1x2x128xf32> to vector<2x128xf32>
    %c0_7 = arith.constant 0 : index
    %c0_8 = arith.constant 0 : index
    %8 = arith.index_cast %c0_i32 : i32 to index
    %c0_9 = arith.constant 0 : index
    %c0_10 = arith.constant 0 : index
    %9 = vector.load %arg4[%c0_7, %c0_8, %8, %c0_9, %c0_10] : memref<1x2x4x4x128xf32, #tpu.memory_space<vmem>>, vector<1x1x1x4x128xf32>
    %10 = vector.shape_cast %9 : vector<1x1x1x4x128xf32> to vector<4x128xf32>
    %c0_11 = arith.constant 0 : index
    %c1_12 = arith.constant 1 : index
    %11 = arith.index_cast %c0_i32 : i32 to index
    %c0_13 = arith.constant 0 : index
    %c0_14 = arith.constant 0 : index
    %12 = vector.load %arg4[%c0_11, %c1_12, %11, %c0_13, %c0_14] : memref<1x2x4x4x128xf32, #tpu.memory_space<vmem>>, vector<1x1x1x4x128xf32>
    %13 = vector.shape_cast %12 : vector<1x1x1x4x128xf32> to vector<4x128xf32>
    %14 = arith.addf %10, %13 : vector<4x128xf32>
    %15 = vector.shape_cast %14 : vector<4x128xf32> to vector<1x4x128xf32>
    %16 = arith.subf %13, %10 : vector<4x128xf32>
    %17 = vector.shape_cast %16 : vector<4x128xf32> to vector<1x4x128xf32>
    %18 = arith.addf %4, %7 : vector<2x128xf32>
    %19 = vector.shape_cast %18 : vector<2x128xf32> to vector<2x1x128xf32>
    %20 = vector.shape_cast %10 : vector<4x128xf32> to vector<1x4x128xf32>
    %21 = vector.broadcast %20 : vector<1x4x128xf32> to vector<2x4x128xf32>
    %22 = vector.broadcast %19 : vector<2x1x128xf32> to vector<2x4x128xf32>
    %23 = arith.mulf %21, %22 : vector<2x4x128xf32>
    %24 = vector.shape_cast %7 : vector<2x128xf32> to vector<2x1x128xf32>
    %25 = vector.broadcast %24 : vector<2x1x128xf32> to vector<2x4x128xf32>
    %26 = vector.broadcast %15 : vector<1x4x128xf32> to vector<2x4x128xf32>
    %27 = arith.mulf %25, %26 : vector<2x4x128xf32>
    %28 = arith.subf %23, %27 : vector<2x4x128xf32>
    %29 = arith.addf %0, %28 : vector<2x4x128xf32>
    %30 = vector.shape_cast %4 : vector<2x128xf32> to vector<2x1x128xf32>
    %31 = vector.broadcast %30 : vector<2x1x128xf32> to vector<2x4x128xf32>
    %32 = vector.broadcast %17 : vector<1x4x128xf32> to vector<2x4x128xf32>
    %33 = arith.mulf %31, %32 : vector<2x4x128xf32>
    %34 = arith.addf %23, %33 : vector<2x4x128xf32>
    %35 = arith.addf %1, %34 : vector<2x4x128xf32>
    %c1_i32 = arith.constant 1 : i32
    %c0_15 = arith.constant 0 : index
    %c0_16 = arith.constant 0 : index
    %36 = arith.index_cast %c1_i32 : i32 to index
    %c0_17 = arith.constant 0 : index
    %c0_18 = arith.constant 0 : index
    %37 = vector.load %arg3[%c0_15, %c0_16, %36, %c0_17, %c0_18] : memref<1x2x4x2x128xf32, #tpu.memory_space<vmem>>, vector<1x1x1x2x128xf32>
    %38 = vector.shape_cast %37 : vector<1x1x1x2x128xf32> to vector<2x128xf32>
    %c0_19 = arith.constant 0 : index
    %c1_20 = arith.constant 1 : index
    %39 = arith.index_cast %c1_i32 : i32 to index
    %c0_21 = arith.constant 0 : index
    %c0_22 = arith.constant 0 : index
    %40 = vector.load %arg3[%c0_19, %c1_20, %39, %c0_21, %c0_22] : memref<1x2x4x2x128xf32, #tpu.memory_space<vmem>>, vector<1x1x1x2x128xf32>
    %41 = vector.shape_cast %40 : vector<1x1x1x2x128xf32> to vector<2x128xf32>
    %c0_23 = arith.constant 0 : index
    %c0_24 = arith.constant 0 : index
    %42 = arith.index_cast %c1_i32 : i32 to index
    %c0_25 = arith.constant 0 : index
    %c0_26 = arith.constant 0 : index
    %43 = vector.load %arg4[%c0_23, %c0_24, %42, %c0_25, %c0_26] : memref<1x2x4x4x128xf32, #tpu.memory_space<vmem>>, vector<1x1x1x4x128xf32>
    %44 = vector.shape_cast %43 : vector<1x1x1x4x128xf32> to vector<4x128xf32>
    %c0_27 = arith.constant 0 : index
    %c1_28 = arith.constant 1 : index
    %45 = arith.index_cast %c1_i32 : i32 to index
    %c0_29 = arith.constant 0 : index
    %c0_30 = arith.constant 0 : index
    %46 = vector.load %arg4[%c0_27, %c1_28, %45, %c0_29, %c0_30] : memref<1x2x4x4x128xf32, #tpu.memory_space<vmem>>, vector<1x1x1x4x128xf32>
    %47 = vector.shape_cast %46 : vector<1x1x1x4x128xf32> to vector<4x128xf32>
    %48 = arith.addf %44, %47 : vector<4x128xf32>
    %49 = vector.shape_cast %48 : vector<4x128xf32> to vector<1x4x128xf32>
    %50 = arith.subf %47, %44 : vector<4x128xf32>
    %51 = vector.shape_cast %50 : vector<4x128xf32> to vector<1x4x128xf32>
    %52 = arith.addf %38, %41 : vector<2x128xf32>
    %53 = vector.shape_cast %52 : vector<2x128xf32> to vector<2x1x128xf32>
    %54 = vector.shape_cast %44 : vector<4x128xf32> to vector<1x4x128xf32>
    %55 = vector.broadcast %54 : vector<1x4x128xf32> to vector<2x4x128xf32>
    %56 = vector.broadcast %53 : vector<2x1x128xf32> to vector<2x4x128xf32>
    %57 = arith.mulf %55, %56 : vector<2x4x128xf32>
    %58 = vector.shape_cast %41 : vector<2x128xf32> to vector<2x1x128xf32>
    %59 = vector.broadcast %58 : vector<2x1x128xf32> to vector<2x4x128xf32>
    %60 = vector.broadcast %49 : vector<1x4x128xf32> to vector<2x4x128xf32>
    %61 = arith.mulf %59, %60 : vector<2x4x128xf32>
    %62 = arith.subf %57, %61 : vector<2x4x128xf32>
    %63 = arith.addf %29, %62 : vector<2x4x128xf32>
    %64 = vector.shape_cast %38 : vector<2x128xf32> to vector<2x1x128xf32>
    %65 = vector.broadcast %64 : vector<2x1x128xf32> to vector<2x4x128xf32>
    %66 = vector.broadcast %51 : vector<1x4x128xf32> to vector<2x4x128xf32>
    %67 = arith.mulf %65, %66 : vector<2x4x128xf32>
    %68 = arith.addf %57, %67 : vector<2x4x128xf32>
    %69 = arith.addf %35, %68 : vector<2x4x128xf32>
    %c2_i32 = arith.constant 2 : i32
    %c0_31 = arith.constant 0 : index
    %c0_32 = arith.constant 0 : index
    %70 = arith.index_cast %c2_i32 : i32 to index
    %c0_33 = arith.constant 0 : index
    %c0_34 = arith.constant 0 : index
    %71 = vector.load %arg3[%c0_31, %c0_32, %70, %c0_33, %c0_34] : memref<1x2x4x2x128xf32, #tpu.memory_space<vmem>>, vector<1x1x1x2x128xf32>
    %72 = vector.shape_cast %71 : vector<1x1x1x2x128xf32> to vector<2x128xf32>
    %c0_35 = arith.constant 0 : index
    %c1_36 = arith.constant 1 : index
    %73 = arith.index_cast %c2_i32 : i32 to index
    %c0_37 = arith.constant 0 : index
    %c0_38 = arith.constant 0 : index
    %74 = vector.load %arg3[%c0_35, %c1_36, %73, %c0_37, %c0_38] : memref<1x2x4x2x128xf32, #tpu.memory_space<vmem>>, vector<1x1x1x2x128xf32>
    %75 = vector.shape_cast %74 : vector<1x1x1x2x128xf32> to vector<2x128xf32>
    %c0_39 = arith.constant 0 : index
    %c0_40 = arith.constant 0 : index
    %76 = arith.index_cast %c2_i32 : i32 to index
    %c0_41 = arith.constant 0 : index
    %c0_42 = arith.constant 0 : index
    %77 = vector.load %arg4[%c0_39, %c0_40, %76, %c0_41, %c0_42] : memref<1x2x4x4x128xf32, #tpu.memory_space<vmem>>, vector<1x1x1x4x128xf32>
    %78 = vector.shape_cast %77 : vector<1x1x1x4x128xf32> to vector<4x128xf32>
    %c0_43 = arith.constant 0 : index
    %c1_44 = arith.constant 1 : index
    %79 = arith.index_cast %c2_i32 : i32 to index
    %c0_45 = arith.constant 0 : index
    %c0_46 = arith.constant 0 : index
    %80 = vector.load %arg4[%c0_43, %c1_44, %79, %c0_45, %c0_46] : memref<1x2x4x4x128xf32, #tpu.memory_space<vmem>>, vector<1x1x1x4x128xf32>
    %81 = vector.shape_cast %80 : vector<1x1x1x4x128xf32> to vector<4x128xf32>
    %82 = arith.addf %78, %81 : vector<4x128xf32>
    %83 = vector.shape_cast %82 : vector<4x128xf32> to vector<1x4x128xf32>
    %84 = arith.subf %81, %78 : vector<4x128xf32>
    %85 = vector.shape_cast %84 : vector<4x128xf32> to vector<1x4x128xf32>
    %86 = arith.addf %72, %75 : vector<2x128xf32>
    %87 = vector.shape_cast %86 : vector<2x128xf32> to vector<2x1x128xf32>
    %88 = vector.shape_cast %78 : vector<4x128xf32> to vector<1x4x128xf32>
    %89 = vector.broadcast %88 : vector<1x4x128xf32> to vector<2x4x128xf32>
    %90 = vector.broadcast %87 : vector<2x1x128xf32> to vector<2x4x128xf32>
    %91 = arith.mulf %89, %90 : vector<2x4x128xf32>
    %92 = vector.shape_cast %75 : vector<2x128xf32> to vector<2x1x128xf32>
    %93 = vector.broadcast %92 : vector<2x1x128xf32> to vector<2x4x128xf32>
    %94 = vector.broadcast %83 : vector<1x4x128xf32> to vector<2x4x128xf32>
    %95 = arith.mulf %93, %94 : vector<2x4x128xf32>
    %96 = arith.subf %91, %95 : vector<2x4x128xf32>
    %97 = arith.addf %63, %96 : vector<2x4x128xf32>
    %98 = vector.shape_cast %72 : vector<2x128xf32> to vector<2x1x128xf32>
    %99 = vector.broadcast %98 : vector<2x1x128xf32> to vector<2x4x128xf32>
    %100 = vector.broadcast %85 : vector<1x4x128xf32> to vector<2x4x128xf32>
    %101 = arith.mulf %99, %100 : vector<2x4x128xf32>
    %102 = arith.addf %91, %101 : vector<2x4x128xf32>
    %103 = arith.addf %69, %102 : vector<2x4x128xf32>
    %c3_i32 = arith.constant 3 : i32
    %c0_47 = arith.constant 0 : index
    %c0_48 = arith.constant 0 : index
    %104 = arith.index_cast %c3_i32 : i32 to index
    %c0_49 = arith.constant 0 : index
    %c0_50 = arith.constant 0 : index
    %105 = vector.load %arg3[%c0_47, %c0_48, %104, %c0_49, %c0_50] : memref<1x2x4x2x128xf32, #tpu.memory_space<vmem>>, vector<1x1x1x2x128xf32>
    %106 = vector.shape_cast %105 : vector<1x1x1x2x128xf32> to vector<2x128xf32>
    %c0_51 = arith.constant 0 : index
    %c1_52 = arith.constant 1 : index
    %107 = arith.index_cast %c3_i32 : i32 to index
    %c0_53 = arith.constant 0 : index
    %c0_54 = arith.constant 0 : index
    %108 = vector.load %arg3[%c0_51, %c1_52, %107, %c0_53, %c0_54] : memref<1x2x4x2x128xf32, #tpu.memory_space<vmem>>, vector<1x1x1x2x128xf32>
    %109 = vector.shape_cast %108 : vector<1x1x1x2x128xf32> to vector<2x128xf32>
    %c0_55 = arith.constant 0 : index
    %c0_56 = arith.constant 0 : index
    %110 = arith.index_cast %c3_i32 : i32 to index
    %c0_57 = arith.constant 0 : index
    %c0_58 = arith.constant 0 : index
    %111 = vector.load %arg4[%c0_55, %c0_56, %110, %c0_57, %c0_58] : memref<1x2x4x4x128xf32, #tpu.memory_space<vmem>>, vector<1x1x1x4x128xf32>
    %112 = vector.shape_cast %111 : vector<1x1x1x4x128xf32> to vector<4x128xf32>
    %c0_59 = arith.constant 0 : index
    %c1_60 = arith.constant 1 : index
    %113 = arith.index_cast %c3_i32 : i32 to index
    %c0_61 = arith.constant 0 : index
    %c0_62 = arith.constant 0 : index
    %114 = vector.load %arg4[%c0_59, %c1_60, %113, %c0_61, %c0_62] : memref<1x2x4x4x128xf32, #tpu.memory_space<vmem>>, vector<1x1x1x4x128xf32>
    %115 = vector.shape_cast %114 : vector<1x1x1x4x128xf32> to vector<4x128xf32>
    %116 = arith.addf %112, %115 : vector<4x128xf32>
    %117 = vector.shape_cast %116 : vector<4x128xf32> to vector<1x4x128xf32>
    %118 = arith.subf %115, %112 : vector<4x128xf32>
    %119 = vector.shape_cast %118 : vector<4x128xf32> to vector<1x4x128xf32>
    %120 = arith.addf %106, %109 : vector<2x128xf32>
    %121 = vector.shape_cast %120 : vector<2x128xf32> to vector<2x1x128xf32>
    %122 = vector.shape_cast %112 : vector<4x128xf32> to vector<1x4x128xf32>
    %123 = vector.broadcast %122 : vector<1x4x128xf32> to vector<2x4x128xf32>
    %124 = vector.broadcast %121 : vector<2x1x128xf32> to vector<2x4x128xf32>
    %125 = arith.mulf %123, %124 : vector<2x4x128xf32>
    %126 = vector.shape_cast %109 : vector<2x128xf32> to vector<2x1x128xf32>
    %127 = vector.broadcast %126 : vector<2x1x128xf32> to vector<2x4x128xf32>
    %128 = vector.broadcast %117 : vector<1x4x128xf32> to vector<2x4x128xf32>
    %129 = arith.mulf %127, %128 : vector<2x4x128xf32>
    %130 = arith.subf %125, %129 : vector<2x4x128xf32>
    %131 = arith.addf %97, %130 : vector<2x4x128xf32>
    %132 = vector.shape_cast %106 : vector<2x128xf32> to vector<2x1x128xf32>
    %133 = vector.broadcast %132 : vector<2x1x128xf32> to vector<2x4x128xf32>
    %134 = vector.broadcast %119 : vector<1x4x128xf32> to vector<2x4x128xf32>
    %135 = arith.mulf %133, %134 : vector<2x4x128xf32>
    %136 = arith.addf %125, %135 : vector<2x4x128xf32>
    %137 = arith.addf %103, %136 : vector<2x4x128xf32>
    %c4_i32 = arith.constant 4 : i32
    %c0_63 = arith.constant 0 : index
    %c0_64 = arith.constant 0 : index
    %c0_65 = arith.constant 0 : index
    %c0_66 = arith.constant 0 : index
    %c0_67 = arith.constant 0 : index
    %138 = vector.load %arg5[%c0_63, %c0_64, %c0_65, %c0_66, %c0_67] : memref<1x2x2x4x128xf32, #tpu.memory_space<vmem>>, vector<1x1x2x4x128xf32>
    %139 = vector.shape_cast %138 : vector<1x1x2x4x128xf32> to vector<2x4x128xf32>
    %140 = vector.shape_cast %131 : vector<2x4x128xf32> to vector<1x1x2x4x128xf32>
    tpu.vector_store %arg5[%c0_63, %c0_64, %c0_65, %c0_66, %c0_67], %140 {strides = array<i32>} : memref<1x2x2x4x128xf32, #tpu.memory_space<vmem>>, vector<1x1x2x4x128xf32>,
    %c0_68 = arith.constant 0 : index
    %c1_69 = arith.constant 1 : index
    %c0_70 = arith.constant 0 : index
    %c0_71 = arith.constant 0 : index
    %c0_72 = arith.constant 0 : index
    %141 = vector.load %arg5[%c0_68, %c1_69, %c0_70, %c0_71, %c0_72] : memref<1x2x2x4x128xf32, #tpu.memory_space<vmem>>, vector<1x1x2x4x128xf32>
    %142 = vector.shape_cast %141 : vector<1x1x2x4x128xf32> to vector<2x4x128xf32>
    %143 = vector.shape_cast %137 : vector<2x4x128xf32> to vector<1x1x2x4x128xf32>
    tpu.vector_store %arg5[%c0_68, %c1_69, %c0_70, %c0_71, %c0_72], %143 {strides = array<i32>} : memref<1x2x2x4x128xf32, #tpu.memory_space<vmem>>, vector<1x1x2x4x128xf32>,
    return
  }
  func.func @transform_0(%arg0: i32, %arg1: i32, %arg2: i32) -> (i32, i32, i32, i32, i32) {
    %c0_i32 = arith.constant 0 : i32
    %c0_i32_0 = arith.constant 0 : i32
    %c0_i32_1 = arith.constant 0 : i32
    %c0_i32_2 = arith.constant 0 : i32
    return %arg0, %c0_i32, %c0_i32_0, %c0_i32_1, %arg1 : i32, i32, i32, i32, i32
  }
  func.func @transform_1(%arg0: i32, %arg1: i32, %arg2: i32) -> (i32, i32, i32, i32, i32) {
    %c0_i32 = arith.constant 0 : i32
    %c0_i32_0 = arith.constant 0 : i32
    %c0_i32_1 = arith.constant 0 : i32
    return %arg0, %c0_i32, %c0_i32_0, %arg2, %arg1 : i32, i32, i32, i32, i32
  }
  func.func @transform_2(%arg0: i32, %arg1: i32, %arg2: i32) -> (i32, i32, i32, i32, i32) {
    %c0_i32 = arith.constant 0 : i32
    %c0_i32_0 = arith.constant 0 : i32
    %c0_i32_1 = arith.constant 0 : i32
    return %arg0, %c0_i32, %c0_i32_0, %arg2, %arg1 : i32, i32, i32, i32, i32
  }
}

</mosaic_0001>

<bundles_post_ra>
// kernel: tpu_custom_call.1
= control target key start
LH: loop header
LB: loop body
LE: loop exit
PB: predicated region body
PF: predicated region fallthrough
CT: control target
= control target key end

     0   :  { %7 = vsyncpa [#allocation3], 0  ;;  %s1558_s0 = inlined_call_operand.hbm [shape: f32[2,2,4,2,128], index: 0, kind: input, shape index: {}]   ;;  %s1559_s1 = inlined_call_operand.hbm [shape: f32[2,2,4,4,128], index: 1, kind: input, shape index: {}]   ;;  %s1560_s2 = inlined_call_operand.hbm [shape: f32[2,2,2,4,128], index: 2, kind: output, shape index: {}]  }
   0x1   :  { %9 = vsyncpa [#allocation3 + $0x1], 0 }
   0x2   :  { %10 = vsyncpa [#allocation6], 0 }
   0x3   :  { %12 = vsyncpa [#allocation6 + $0x1], 0 }
   0x4   :  { %13 = vsyncpa [#allocation4], 0 }
   0x5   :  { %15 = vsyncpa [#allocation4 + $0x1], 0  ;;  %s1149_s9 = smov 0   ;;  %s1151_s10 = smov 0  }
   0x6   :  { %s1153_s11 = smov 0   ;;  %s1155_s12 = smov 0  }
   0x7   :  { %s1157_s13 = smov 0   ;;  %s1159_s14 = smov 0  }
   0x8 LB: > { %s864_s15 = sadd.s32 4294967295, %s1122_s14   ;;  %s865_s16 = sadd.s32 4294967294, %s1122_s14   ;;  %s1122_s14 = sphi %s1159_s14, %s21_s14   ;;  %s1118_s13 = sphi %s1157_s13, %s1578_s13   ;;  %s1114_s12 = sphi %s1155_s12, %s1577_s12   ;;  %s1110_s11 = sphi %s1153_s11, %s1576_s11   ;;  %s1106_s10 = sphi %s1151_s10, %s1575_s10   ;;  %s1102_s9 = sphi %s1149_s9, %s1574_s9  }
   0x9   : > { %s40_s17 = sadd.s32 1, %s1118_s13  ;;  %s49_s18 = sadd.s32 1, %s1110_s11 }
   0xa   : > { %p42_p0 = scmp.ge.s32.totalorder %s40_s17, 2  ;;  %p56_p1 = scmp.ne.s32.totalorder %s1110_s11, %s1106_s10 }
   0xb   : > { %p57_p2 = scmp.eq.s32.totalorder %s1122_s14, 0  ;;  %p62_p3 = scmp.ne.s32.totalorder %s1106_s10, %s1102_s9 }
   0xc   : > { %s1580_s17 = smov (%p42_p0, %s40_s17), 0  ;;  %p63_p5 = scmp.eq.s32.totalorder %s864_s15, 0 }
   0xd   : > { %p1190_p4 = por %p57_p2, %p56_p1  ;;  %s44_s20 = ssub.s32 %s1118_s13, %s1580_s17 }
   0xe   : > { %p120_p6 = scmp.eq.s32.totalorder %s864_s15, 1  ;;  %p47_p7 = scmp.eq.s32.totalorder %s44_s20, 0 }
   0xf   : > { %p1196_p8 = por %p63_p5, %p62_p3  ;;  %p126_p10 = scmp.eq.s32.totalorder %s865_s16, 1 }
  0x10   : > { %p1200_p9 = por %p120_p6, %p56_p1  ;;  %p919_p13 = scmp.lt.s32.totalorder %s1122_s14, 2 }
  0x11   : > { %s1564_s21 = scalar_select %p1196_p8, 1, 0 }
  0x12   : > { %s1565_s22 = scalar_select %p1200_p9, 1, 0 }
  0x13   : > { %s1205_s23 = scalar_select %p47_p7, %s1110_s11, %s49_s18  }
  0x14   : > { %p1207_p11 = por %p126_p10, %p62_p3  ;;  %s1214_s25 = sand.u32 1, %s1110_s11  }
  0x15   : > { %s868_s26 = sshll.u32 %s1214_s25, 4  ;;  %s899_s27 = sshll.u32 %s1118_s13, 8 }
  0x16   : > { %s1566_s24 = scalar_select %p1207_p11, 1, 0 }
  0x17   : > { %s1221_s30 = scalar_lea.hbm %s1558_s0, %s899_s27  ;;  %s150_s3 = scalar_lea.vmem [#allocation2], %s868_s26 }
  0x18   : > { %s158_s4 = sshll.u32 %s150_s3, 4  ;;  %p1227_p0 = pnand %p919_p13, %p1190_p4  ;;  %s1223_s4 = int_to_ptr.vmem [resolvable:$true] %s158_s4 }
  0x19   : > { %s147_s6 = scalar_lea.sflag [#allocation3], %s1214_s25  ;;  %s976_s7 = scalar_lea.hbm %s1221_s30, 256 }
  0x1a   : > { %p977_p2 = scmp.ne.s32.totalorder %s1221_s30, %s976_s7  ;;  %p978_p3 = pneg %p1227_p0 }
  0x1b   : > { %s981_s16 = scalar_lea.hbm %s1558_s0, 512  ;;  %p982_p4 = scmp.lt.u32.totalorder %s1221_s30, %s1558_s0 }
  0x1c   : > { %p979_p5 = pnand %p978_p3, %p977_p2  ;;  %p983_p7 = scmp.lt.u32.totalorder %s981_s16, %s976_s7 }
  0x1d   : > { %p985_p13 = scmp.lt.u32.totalorder %s976_s7, %s1221_s30 }
  0x1e   : > { %p980_p6 = pneg %p979_p5  ;;  %p984_p10 = por %p983_p7, %p982_p4 }
  0x20   : > { %p986_p12 = por %p985_p13, %p984_p10 }
  0x22   : > { %p987_p1 = pnand %p986_p12, %p980_p6 }
  0x24   : > { %990 = shalt.err (!%p987_p1)
}
  0x25   : > { %s991_s20 = scalar_lea.vmem %s1223_s4, 256  ;;  %s1124_s26 = smov [#allocation2]  }
  0x26   : > { %p992_p2 = scmp.ne.s32.totalorder %s1223_s4, %s991_s20  ;;  %s996_s27 = sshll.u32 %s1124_s26, 4  ;;  %s997_s27 = int_to_ptr.vmem [resolvable:$false] %s996_s27 }
  0x27   : > { %s998_s28 = scalar_lea.vmem %s997_s27, 512  ;;  %p999_p9 = scmp.lt.s32.totalorder %s1223_s4, %s997_s27 }
  0x28   : > { %p994_p5 = pnand %p992_p2, %p978_p3  ;;  %p1000_p4 = scmp.lt.s32.totalorder %s998_s28, %s991_s20 }
  0x2a   : > { %p995_p11 = pneg %p994_p5  ;;  %p1001_p7 = por %p1000_p4, %p999_p9 }
  0x2c   : > { %p1002_p10 = pnand %p1001_p7, %p995_p11 }
  0x2e   : > { %1005 = shalt.err (!%p1002_p10)
}
  0x2f   : > { %s1125_s29 = smov 32   ;;  %s1126_s3 = smov 2  }
  0x30   : > { %911 = dma.hbm_to_vmem [thread:$0]  (!%p1227_p0), %s1221_s30, 256, %s1223_s4, %s147_s6, %s1125_s29, %s1125_s29, %s1126_s3  }
  0x31   : > { %p189_p12 = scmp.lt.s32.totalorder %s1122_s14, 3  ;;  %s871_s7 = sshll.u32 %s1214_s25, 5 }
  0x32   : > { %s900_s8 = sshll.u32 %s1118_s13, 9  ;;  %p1568_p9 = scmp.ge.s32.totalorder %s1122_s14, 1 }
  0x33   : > { %s1272_s19 = scalar_lea.hbm %s1559_s1, %s900_s8  ;;  %s172_s20 = scalar_lea.vmem [#allocation5], %s871_s7 }
  0x34   : > { %p1265_p11 = pnand %p1568_p9, %p189_p12  ;;  %s181_s26 = sshll.u32 %s172_s20, 4  ;;  %s1274_s26 = int_to_ptr.vmem [resolvable:$true] %s181_s26 }
  0x35   : > { %s169_s30 = scalar_lea.sflag [#allocation6], %s1214_s25  ;;  %s1006_s4 = scalar_lea.hbm %s1272_s19, 512 }
  0x36   : > { %p1007_p1 = scmp.ne.s32.totalorder %s1272_s19, %s1006_s4  ;;  %s1011_s28 = scalar_lea.hbm %s1559_s1, 1024 }
  0x37   : > { %p1012_p2 = scmp.lt.u32.totalorder %s1272_s19, %s1559_s1  ;;  %p1013_p5 = scmp.lt.u32.totalorder %s1011_s28, %s1006_s4 }
  0x38   : > { %p1009_p6 = pnand %p1007_p1, %p978_p3  ;;  %p1015_p7 = scmp.lt.u32.totalorder %s1006_s4, %s1272_s19 }
  0x39   : > { %p1014_p4 = por %p1013_p5, %p1012_p2 }
  0x3a   : > { %p1010_p13 = pneg %p1009_p6 }
  0x3b   : > { %p1016_p10 = por %p1015_p7, %p1014_p4 }
  0x3d   : > { %p1017_p12 = pnand %p1016_p10, %p1010_p13 }
  0x3f   : > { %1020 = shalt.err (!%p1017_p12)
}
  0x40   : > { %s1021_s7 = scalar_lea.vmem %s1274_s26, 512  ;;  %s1127_s8 = smov [#allocation5]  }
  0x41   : > { %p1022_p9 = scmp.ne.s32.totalorder %s1274_s26, %s1021_s7  ;;  %s1026_s16 = sshll.u32 %s1127_s8, 4  ;;  %s1027_s16 = int_to_ptr.vmem [resolvable:$false] %s1026_s16 }
  0x42   : > { %s1028_s18 = scalar_lea.vmem %s1027_s16, 1024  ;;  %p1029_p8 = scmp.lt.s32.totalorder %s1274_s26, %s1027_s16 }
  0x43   : > { %p1024_p1 = pnand %p1022_p9, %p978_p3  ;;  %p1030_p2 = scmp.lt.s32.totalorder %s1028_s18, %s1021_s7 }
  0x45   : > { %p1025_p6 = pneg %p1024_p1  ;;  %p1031_p5 = por %p1030_p2, %p1029_p8 }
  0x47   : > { %p1032_p4 = pnand %p1031_p5, %p1025_p6 }
  0x49   : > { %1035 = shalt.err (!%p1032_p4)
}
  0x4a   : > { %s1128_s20 = smov 64   ;;  %s1129_s4 = smov 4  }
  0x4b   : > { %914 = dma.hbm_to_vmem [thread:$0]  (!%p1227_p0), %s1272_s19, 512, %s1274_s26, %s169_s30, %s1128_s20, %s1128_s20, %s1129_s4  }
  0x4c   : > { %193 = sbr.rel (%p1265_p11) target bundleno = 148 (0x94), region = 28  ;;  %s1305_s6 = sand.u32 (!%p1265_p11), 1, %s1106_s10  }
  0x4d   : > { %s875_s27 = sshll.u32 (!%p1265_p11), %s1305_s6, 4  ;;  %s196_s28 = scalar_lea.sflag (!%p1265_p11), [#allocation3], %s1305_s6 }
  0x4e   : > { %s1311_s29 = scalar_lea.vmem (!%p1265_p11), [#allocation2], %s875_s27  ;;  %p1570_p8 = scmp.ne.s32.totalorder (!%p1265_p11), %s1564_s21, 0 }
  0x53   : > { %1089 = dma.done.wait (%p1570_p8), %s196_s28, 256  }
  0x54   : > { %1091 = vsyncadd (%p1570_p8), %s196_s28, 4294967040  ;;  %s876_s25 = sshll.u32 %s1305_s6, 5  ;;  %s205_s5 = scalar_lea.sflag [#allocation6], %s1305_s6 }
  0x55   : > { %s1319_s15 = scalar_lea.vmem [#allocation5], %s876_s25 }
  0x56   : > { %1093 = dma.done.wait (%p1570_p8), %s205_s5, 512  }
  0x57   : > { %1095 = vsyncadd (%p1570_p8), %s205_s5, 4294966784  ;;  %v247_v0 = vlaneseq  ;;  %v1130_v1 = vmov 1966171168   ;;  %v234_v7 = vld [vmem:[%s1311_s29] sm:$0x3]  ;;  %s1452_s21 = scalar_lea.vmem [#allocation7], %s875_s27 }
  0x58   : > { %v245_v2 = vunpack.c.l.s4 %v1130_v1  ;;  %v878_v8 = vld [vmem:[%s1311_s29 + $0x8] sm:$0x3]  ;;  %v1332_v9 = vld [vmem:[%s1319_s15] sm:$0xf]  ;;  %v879_v10 = vld [vmem:[%s1319_s15 + $0x10] sm:$0xf] }
  0x59   : > { %v248_v3 = vshrl.u32 %v247_v0, 7  ;;  %v242_v11 = vadd.f32 %v878_v8, %v234_v7  ;;  %v1337_v13 = vld [vmem:[%s1311_s29 + $0x2] sm:$0x3]  ;;  %v881_v14 = vld [vmem:[%s1311_s29 + $0xa] sm:$0x3]  ;;  %v240_v16 = vadd.f32 %v879_v10, %v1332_v9  ;;  %v1356_v22 = vsub.f32 %v879_v10, %v1332_v9  ;;  %s749_s19 = sshll.u32 %s1452_s21, 4  ;;  %s1503_s19 = int_to_ptr.vmem [resolvable:$true] %s749_s19 }
  0x5a   : > { %v246_v4 = vunpack.c.0.s8 %v245_v2  ;;  %v1345_v17 = vld [vmem:[%s1319_s15 + $0x4] sm:$0xf]  ;;  %v1348_v18 = vld [vmem:[%s1319_s15 + $0x14] sm:$0xf]  ;;  %v366_v19 = vadd.f32 %v881_v14, %v1337_v13  ;;  %v885_v26 = vld [vmem:[%s1311_s29 + $0xc] sm:$0x3] }
  0x5b   : > { %v1327_v6 = vsub.s32 0, %v248_v3  ;;  %v1353_v21 = vld [vmem:[%s1311_s29 + $0x4] sm:$0x3]  ;;  %v1362_v25 = vadd.f32 %v1348_v18, %v1345_v17  ;;  %v1366_v27 = vld [vmem:[%s1319_s15 + $0x8] sm:$0xf]  ;;  %s901_s26 = sshll.u32 %s1114_s12, 8 }
  0x5c   : > { %v1325_v5 = vsub.s32 %v246_v4, %v248_v3  ;;  %v1369_v28 = vld [vmem:[%s1319_s15 + $0x18] sm:$0xf]  ;;  %v490_v33 = vadd.f32 %v885_v26, %v1353_v21  ;;  %v1379_v34 = vld [vmem:[%s1311_s29 + $0x6] sm:$0x3]  ;;  %v889_v35 = vld [vmem:[%s1311_s29 + $0xe] sm:$0x3]  ;;  %s1508_s7 = scalar_lea.hbm %s1560_s2, %s901_s26 }
  0x5d   : > { %v1375_v32 = vadd.f32 %v1369_v28, %v1366_v27  ;;  %v1383_v36 = vld [vmem:[%s1319_s15 + $0xc] sm:$0xf]  ;;  %v1389_v40 = vld [vmem:[%s1319_s15 + $0x1c] sm:$0xf]  ;;  %v614_v41 = vadd.f32 %v889_v35, %v1379_v34  ;;  %s734_s8 = scalar_lea.sflag [#allocation4], %s1305_s6  ;;  %s1036_s16 = scalar_lea.vmem %s1503_s19, 256 }
  0x5e   : > { %v285_v12 = vrot.slane %v878_v8, %v1325_v5  ;;  %v1341_v15 = vrot.slane %v234_v7, %v1325_v5  ;;  %v409_v20 = vrot.slane %v881_v14, %v1325_v5  ;;  %v250_v23 = vrot.slane %v242_v11, %v1325_v5  ;;  %p1037_p0 = scmp.ne.s32.totalorder %s1503_s19, %s1036_s16  ;;  %p1571_p3 = scmp.ne.s32.totalorder %s1565_s22, 0 }
  0x5f   : > { %v374_v30 = vrot.slane %v366_v19, %v1325_v5  ;;  %v533_v39 = vrot.slane %v885_v26, %v1325_v5  ;;  %v498_v44 = vrot.slane %v490_v33, %v1325_v5  ;;  %v1397_v45 = vadd.f32 %v1389_v40, %v1383_v36  ;;  %s1131_s12 = smov [#allocation7]  }
  0x60   : > { %v293_v24 = vrot.slane %v285_v12, %v1325_v5  ;;  %v286_v29 = vcombine.high %v285_v12, %v285_v12  ;;  %v417_v31 = vrot.slane %v409_v20, %v1325_v5  ;;  %v258_v37 = vrot.slane %v250_v23, %v1325_v5  ;;  %p1038_p11 = pnand %p1037_p0, %p1571_p3  ;;  %s1040_s18 = sshll.u32 %s1131_s12, 4  ;;  %s1041_s18 = int_to_ptr.vmem [resolvable:$false] %s1040_s18 }
  0x61   : > { %v382_v42 = vrot.slane %v374_v30, %v1325_v5  ;;  %v541_v48 = vrot.slane %v533_v39, %v1325_v5  ;;  %v622_v49 = vrot.slane %v614_v41, %v1325_v5  ;;  %v506_v52 = vrot.slane %v498_v44, %v1325_v5  ;;  %s1042_s20 = scalar_lea.vmem %s1041_s18, 512  ;;  %p1043_p7 = scmp.lt.s32.totalorder %s1503_s19, %s1041_s18 }
  0x62   : > { %v304_v38 = vrot.slane %v293_v24, %v1327_v6  ;;  %v428_v43 = vrot.slane %v417_v31, %v1327_v6  ;;  %v269_v46 = vrot.slane %v258_v37, %v1327_v6  ;;  %v657_v53 = vrot.slane %v889_v35, %v1325_v5  ;;  %p1039_p13 = pneg %p1038_p11  ;;  %p1044_p10 = scmp.lt.s32.totalorder %s1042_s20, %s1036_s16 }
  0x63   : > { %v393_v50 = vrot.slane %v382_v42, %v1327_v6  ;;  %v552_v55 = vrot.slane %v541_v48, %v1327_v6  ;;  %v630_v56 = vrot.slane %v622_v49, %v1325_v5  ;;  %v251_v57 = vcombine.high %v250_v23, %v250_v23 }
  0x64   : > { %v311_v47 = vmul.f32 %v304_v38, %v240_v16  ;;  %v435_v51 = vmul.f32 %v428_v43, %v1362_v25  ;;  %v1407_v54 = vmul.f32 %v269_v46, %v1332_v9  ;;  %v517_v59 = vrot.slane %v506_v52, %v1327_v6  ;;  %p1045_p12 = por %p1044_p10, %p1043_p7 }
  0x65   : > { %v1412_v58 = vmul.f32 %v1345_v17, %v393_v50  ;;  %v665_v60 = vrot.slane %v657_v53, %v1325_v5  ;;  %v300_v61 = vrot.slane %v286_v29, %v1325_v5  ;;  %v559_v63 = vmul.f32 %v552_v55, %v1375_v32 }
  0x66   : > { %v313_v62 = vsub.f32 %v1407_v54, %v311_v47  ;;  %v641_v0 = vrot.slane %v630_v56, %v1327_v6  ;;  %v265_v1 = vrot.slane %v251_v57, %v1325_v5  ;;  %v1423_v3 = vmul.f32 %v1366_v27, %v517_v59  ;;  %p1046_p9 = pnand %p1045_p12, %p1039_p13 }
  0x67   : > { %v437_v2 = vsub.f32 %v1412_v58, %v435_v51  ;;  %v676_v4 = vrot.slane %v665_v60, %v1327_v6  ;;  %v308_v7 = vrot.slane %v300_v61, %v1327_v6  ;;  %v375_v11 = vcombine.high %v374_v30, %v374_v30 }
  0x68   : > { %v1428_v8 = vmul.f32 %v1383_v36, %v641_v0  ;;  %v273_v10 = vrot.slane %v265_v1, %v1327_v6  ;;  %v410_v12 = vcombine.high %v409_v20, %v409_v20  ;;  %v561_v19 = vsub.f32 %v1423_v3, %v559_v63 }
  0x69   : > { %v439_v14 = vadd.f32 %v437_v2, %v313_v62  ;;  %v683_v23 = vmul.f32 %v676_v4, %v1397_v45  ;;  %v312_v24 = vmul.f32 %v308_v7, %v240_v16  ;;  %v389_v29 = vrot.slane %v375_v11, %v1325_v5 }
  0x6a   : > { %v1434_v26 = vmul.f32 %v273_v10, %v1332_v9  ;;  %v424_v31 = vrot.slane %v410_v12, %v1325_v5  ;;  %v499_v33 = vcombine.high %v498_v44, %v498_v44  ;;  %v534_v30 = vcombine.high %v533_v39, %v533_v39 }
  0x6b   : > { %v563_v35 = vadd.f32 %v561_v19, %v439_v14  ;;  %v685_v37 = vsub.f32 %v1428_v8, %v683_v23  ;;  %v623_v20 = vcombine.high %v622_v49, %v622_v49  ;;  %v397_v41 = vrot.slane %v389_v29, %v1327_v6 }
  0x6c   : > { %v314_v38 = vsub.f32 %v1434_v26, %v312_v24  ;;  %v432_v16 = vrot.slane %v424_v31, %v1327_v6  ;;  %v513_v9 = vrot.slane %v499_v33, %v1325_v5  ;;  %v548_v43 = vrot.slane %v534_v30, %v1325_v5 }
  0x6d   : > { %v687_v42 = vadd.f32 %v685_v37, %v563_v35  ;;  %v637_v46 = vrot.slane %v623_v20, %v1325_v5  ;;  %v658_v44 = vcombine.high %v657_v53, %v657_v53  ;;  %v401_v47 = vmul.f32 %v1345_v17, %v397_v41 }
  0x6e   : > { %v436_v48 = vmul.f32 %v432_v16, %v1362_v25  ;;  %v521_v39 = vrot.slane %v513_v9, %v1327_v6  ;;  %v332_v49 = vrot.slane %v1341_v15, %v1325_v5  ;;  %v556_v50 = vrot.slane %v548_v43, %v1327_v6 }
  0x6f   : > { %728 = vst [vmem:[%s1452_s21] sm:$0xf] %v687_v42  ;;  %v645_v51 = vrot.slane %v637_v46, %v1327_v6  ;;  %v672_v52 = vrot.slane %v658_v44, %v1325_v5  ;;  %v365_v53 = vsub.f32 %v1348_v18, %v1345_v17  ;;  %v448_v57 = vrot.slane %v1337_v13, %v1325_v5 }
  0x70   : > { %v438_v25 = vsub.f32 %v401_v47, %v436_v48  ;;  %v525_v55 = vmul.f32 %v1366_v27, %v521_v39  ;;  %v343_v56 = vrot.slane %v332_v49, %v1327_v6  ;;  %v560_v59 = vmul.f32 %v556_v50, %v1375_v32 }
  0x71   : > { %v649_v60 = vmul.f32 %v1383_v36, %v645_v51  ;;  %v680_v61 = vrot.slane %v672_v52, %v1327_v6  ;;  %v489_v62 = vsub.f32 %v1369_v28, %v1366_v27  ;;  %v456_v18 = vrot.slane %v448_v57, %v1325_v5 }
  0x72   : > { %v440_v63 = vadd.f32 %v438_v25, %v314_v38  ;;  %v350_v17 = vmul.f32 %v343_v56, %v1356_v22  ;;  %v572_v0 = vrot.slane %v1353_v21, %v1325_v5  ;;  %v562_v1 = vsub.f32 %v525_v55, %v560_v59 }
  0x73   : > { %v684_v13 = vmul.f32 %v680_v61, %v1397_v45  ;;  %v613_v32 = vsub.f32 %v1389_v40, %v1383_v36  ;;  %v696_v2 = vrot.slane %v1379_v34, %v1325_v5  ;;  %v467_v27 = vrot.slane %v456_v18, %v1327_v6 }
  0x74   : > { %v352_v4 = vadd.f32 %v350_v17, %v1407_v54  ;;  %v580_v28 = vrot.slane %v572_v0, %v1325_v5  ;;  %v325_v7 = vcombine.high %v1341_v15, %v1341_v15  ;;  %v564_v10 = vadd.f32 %v562_v1, %v440_v63 }
  0x75   : > { %v686_v21 = vsub.f32 %v649_v60, %v684_v13  ;;  %v704_v45 = vrot.slane %v696_v2, %v1325_v5  ;;  %v449_v11 = vcombine.high %v448_v57, %v448_v57  ;;  %v474_v12 = vmul.f32 %v467_v27, %v365_v53 }
  0x76   : > { %v591_v36 = vrot.slane %v580_v28, %v1327_v6  ;;  %v339_v34 = vrot.slane %v325_v7, %v1325_v5  ;;  %v573_v40 = vcombine.high %v572_v0, %v572_v0  ;;  %v697_v23 = vcombine.high %v696_v2, %v696_v2 }
  0x77   : > { %v688_v54 = vadd.f32 %v686_v21, %v564_v10  ;;  %v715_v14 = vrot.slane %v704_v45, %v1327_v6  ;;  %v463_v19 = vrot.slane %v449_v11, %v1325_v5  ;;  %v476_v15 = vadd.f32 %v474_v12, %v1412_v58 }
  0x78   : > { %v598_v24 = vmul.f32 %v591_v36, %v489_v62  ;;  %v347_v29 = vrot.slane %v339_v34, %v1327_v6  ;;  %v587_v31 = vrot.slane %v573_v40, %v1325_v5  ;;  %v711_v37 = vrot.slane %v697_v23, %v1325_v5 }
  0x79   : > { %729 = vst [vmem:[%s1452_s21 + $0x4] sm:$0xf] %v688_v54  ;;  %v722_v33 = vmul.f32 %v715_v14, %v613_v32  ;;  %v471_v35 = vrot.slane %v463_v19, %v1327_v6  ;;  %v478_v30 = vadd.f32 %v476_v15, %v352_v4 }
  0x7a   : > { %v600_v20 = vadd.f32 %v598_v24, %v1423_v3  ;;  %v351_v38 = vmul.f32 %v347_v29, %v1356_v22  ;;  %v595_v58 = vrot.slane %v587_v31, %v1327_v6  ;;  %v719_v9 = vrot.slane %v711_v37, %v1327_v6 }
  0x7b   : > { %v724_v41 = vadd.f32 %v722_v33, %v1428_v8  ;;  %v475_v16 = vmul.f32 %v471_v35, %v365_v53 }
  0x7c   : > { %v602_v42 = vadd.f32 %v600_v20, %v478_v30  ;;  %v353_v43 = vadd.f32 %v351_v38, %v1434_v26  ;;  %v599_v5 = vmul.f32 %v595_v58, %v489_v62  ;;  %v723_v44 = vmul.f32 %v719_v9, %v613_v32 }
  0x7d   : > { %v477_v46 = vadd.f32 %v475_v16, %v401_v47 }
  0x7e   : > { %v726_v3 = vadd.f32 %v724_v41, %v602_v42  ;;  %v601_v48 = vadd.f32 %v599_v5, %v525_v55  ;;  %v725_v39 = vadd.f32 %v723_v44, %v649_v60 }
  0x7f   : > { %v479_v22 = vadd.f32 %v477_v46, %v353_v43 }
  0x80   : > { %892 = vst [vmem:[%s1452_s21 + $0x8] sm:$0xf] %v726_v3 }
  0x81   : > { %v603_v8 = vadd.f32 %v601_v48, %v479_v22 }
  0x83   : > { %v727_v6 = vadd.f32 %v725_v39, %v603_v8 }
  0x85   : > { %893 = vst [vmem:[%s1452_s21 + $0xc] sm:$0xf] %v727_v6 }
  0x86   : > { %1049 = shalt.err (!%p1046_p9)
}
  0x87   : > { %s1050_s4 = scalar_lea.hbm %s1508_s7, 256  ;;  %s1054_s29 = scalar_lea.hbm %s1560_s2, 512 }
  0x88   : > { %p1051_p1 = scmp.ne.s32.totalorder %s1508_s7, %s1050_s4  ;;  %p1055_p5 = scmp.lt.u32.totalorder %s1508_s7, %s1560_s2 }
  0x89   : > { %p1056_p4 = scmp.lt.u32.totalorder %s1054_s29, %s1050_s4  ;;  %p1058_p0 = scmp.lt.u32.totalorder %s1050_s4, %s1508_s7 }
  0x8a   : > { %p1052_p6 = pnand %p1051_p1, %p1571_p3 }
  0x8b   : > { %p1057_p8 = por %p1056_p4, %p1055_p5 }
  0x8c   : > { %p1053_p2 = pneg %p1052_p6 }
  0x8d   : > { %p1059_p11 = por %p1058_p0, %p1057_p8 }
  0x8f   : > { %p1060_p13 = pnand %p1059_p11, %p1053_p2 }
  0x91   : > { %1063 = shalt.err (!%p1060_p13)
}
  0x92   : > { %s1132_s15 = smov 64   ;;  %s1133_s21 = smov 4  }
  0x93   : > { %906 = dma.vmem_to_hbm [thread:$0]  (%p1571_p3), %s1503_s19, 256, %s1508_s7, %s734_s8, %s1132_s15, %s1132_s15, %s1133_s21  }
  0x94 PF: > { %s764_s26 = sand.u32 1, %s1102_s9   ;;  %p1572_p7 = scmp.ne.s32.totalorder %s1566_s24, 0 }
  0x95   : > { %p1573_p10 = scmp.ge.s32.totalorder %s1122_s14, 2  ;;  %s765_s30 = scalar_lea.sflag [#allocation4], %s764_s26 }
  0x97   : > { %p916_p12 = pnand %p1573_p10, %p1572_p7 }
  0x99   : > { %1097 = dma.done.wait (!%p916_p12), %s765_s30, 256  }
  0x9a   : > { %1099 = vsyncadd (!%p916_p12), %s765_s30, 4294967040  ;;  %s21_s14 = sadd.s32 1, %s1122_s14   ;;  %s1574_s9 = smov %s1106_s10 }
  0x9b   : > { %p18_p9 = scmp.ge.s32.totalorder %s21_s14, 4   ;;  %s1575_s10 = smov %s1110_s11 }
  0x9c   : > { %s1576_s11 = smov %s1205_s23  ;;  %s1577_s12 = smov %s1118_s13 }
  0x9d   : > { %s1578_s13 = smov %s1580_s17  ;;  %20 = sbr.rel (!%p18_p9) target bundleno = 8 (0x8), region = 101 }
  0xa4   :  { %770 = vsyncpa [#allocation3], 1 }
  0xa5   :  { %772 = vsyncpa [#allocation3 + $0x1], 1 }
  0xa6   :  { %773 = vsyncpa [#allocation6], 1 }
  0xa7   :  { %775 = vsyncpa [#allocation6 + $0x1], 1 }
  0xa8   :  { %776 = vsyncpa [#allocation4], 1 }
  0xa9   :  { %778 = vsyncpa [#allocation4 + $0x1], 1 }

</bundles_post_ra>
